<compile_context>
chip_gen: v5e
topology: v5e:2x2
jax: 0.10.0
libtpu: 0.0.40
codegen_flags: <defaults>
</compile_context>

<pallas_src>
import functools

import jax
import jax.numpy as jnp
from jax.experimental import pallas as pl
from jax.experimental.pallas import tpu as pltpu

_LANE = 128
_SUBLANE = 8


def _ce_rows_kernel(logits_ref, target_ref, loss_ref):
    """Per-row cross-entropy for one (tile_n, C) block."""
    x = logits_ref[...].astype(jnp.float32)              # (tile_n, C)
    tgt = target_ref[...]                                 # (tile_n, 1) int32

    # numerically stable logsumexp over the class (lane) axis
    m = jnp.max(x, axis=-1, keepdims=True)                # (tile_n, 1)
    xm = x - m                                            # reused below
    sum_e = jnp.sum(jnp.exp(xm), axis=-1, keepdims=True)  # (tile_n, 1)

    # gather (logit[target] - max) with an iota compare + select + lane reduce
    class_ids = jax.lax.broadcasted_iota(jnp.int32, (1, x.shape[1]), 1)
    tgt_shift = jnp.sum(jnp.where(class_ids == tgt, xm, 0.0),
                        axis=-1, keepdims=True)           # (tile_n, 1)

    # loss = logsumexp(x) - x[target] = log(sum_e) - (x[target] - max)
    loss_ref[...] = jnp.log(sum_e) - tgt_shift


def _round_up(a, b):
    return ((a + b - 1) // b) * b


@functools.partial(jax.jit, static_argnames=("reduction",))
def cross_entropy(logits, targets, reduction="mean"):
    """Pallas TPU cross-entropy. logits: (N, C) float, targets: (N,) int."""
    N, C = logits.shape
    itemsize = jnp.dtype(logits.dtype).itemsize

    x = logits
    tgt = targets.astype(jnp.int32).reshape(-1, 1)

    # Degenerate tiny-batch case: make sure at least one full sublane of rows
    # exists (cheap pad — only ever touches < 8 rows).
    n_eff = N
    if N < _SUBLANE:
        pad = _SUBLANE - N
        x = jnp.pad(x, ((0, pad), (0, 0)))
        tgt = jnp.pad(tgt, ((0, pad), (0, 0)))
        n_eff = _SUBLANE

    # ---- row tile sizing: ~1 MiB of logits per grid step, <=1024 rows ----
    c_phys = _round_up(C, _LANE)                 # physical lane footprint
    target_tile_bytes = 1 * 1024 * 1024
    tile_n = max(_SUBLANE, min(1024, target_tile_bytes // (c_phys * itemsize)))
    tile_n = min(tile_n, (n_eff // _SUBLANE) * _SUBLANE)   # block start stays in-bounds
    tile_n = max(_SUBLANE, (tile_n // _SUBLANE) * _SUBLANE)
    grid = pl.cdiv(n_eff, tile_n)

    cost = pl.CostEstimate(
        flops=int(5 * n_eff * C),
        transcendentals=int(n_eff * C),
        bytes_accessed=int(n_eff * C * itemsize + n_eff * 4 + n_eff * 4),
    )

    losses = pl.pallas_call(
        _ce_rows_kernel,
        out_shape=jax.ShapeDtypeStruct((n_eff, 1), jnp.float32),
        grid_spec=pltpu.PrefetchScalarGridSpec(
            num_scalar_prefetch=0,
            grid=(grid,),
            in_specs=[
                pl.BlockSpec((tile_n, C), lambda i: (i, 0)),
                pl.BlockSpec((tile_n, 1), lambda i: (i, 0)),
            ],
            out_specs=pl.BlockSpec((tile_n, 1), lambda i: (i, 0)),
        ),
        compiler_params=pltpu.CompilerParams(
            dimension_semantics=("parallel",),
            vmem_limit_bytes=32 * 1024 * 1024,
        ),
        cost_estimate=cost,
    )(x, tgt)

    per_row = losses[:N, 0]
    if reduction == "mean":
        return jnp.sum(per_row) / jnp.float32(N)
    elif reduction == "sum":
        return jnp.sum(per_row)
    elif reduction == "none":
        return per_row
    else:
        raise ValueError(f"unknown reduction: {reduction}")


def _reference_ce(logits, targets, reduction="mean"):
    logits = logits.astype(jnp.float32)
    logz = jax.nn.logsumexp(logits, axis=-1)
    tgt_logit = jnp.take_along_axis(
        logits, targets[:, None].astype(jnp.int32), axis=-1)[:, 0]
    per_row = logz - tgt_logit
    if reduction == "mean":
        return jnp.mean(per_row)
    if reduction == "sum":
        return jnp.sum(per_row)
    return per_row


if __name__ == "__main__":
    key = jax.random.PRNGKey(0)
    k1, k2, k3, k4, k5, k6 = jax.random.split(key, 6)

    # case 1: small, matches the module's typical (N, C) usage
    N1, C1 = 8, 32
    logits1 = jax.random.normal(k1, (N1, C1), dtype=jnp.float32)
    targets1 = jax.random.randint(k2, (N1,), 0, C1, dtype=jnp.int32)
    loss1 = jax.block_until_ready(cross_entropy(logits1, targets1))
    ref1 = _reference_ce(logits1, targets1)
    assert jnp.allclose(loss1, ref1, atol=1e-5, rtol=1e-5), (loss1, ref1)

    # case 2: non-aligned N and C exercise partial row blocks + lane masking
    N2, C2 = 13, 200
    logits2 = jax.random.normal(k3, (N2, C2), dtype=jnp.float32)
    targets2 = jax.random.randint(k4, (N2,), 0, C2, dtype=jnp.int32)
    loss2 = jax.block_until_ready(cross_entropy(logits2, targets2))
    ref2 = _reference_ce(logits2, targets2)
    assert jnp.allclose(loss2, ref2, atol=1e-5, rtol=1e-5), (loss2, ref2)

    # case 3: bf16 logits, 'none' reduction, multiple row tiles
    N3, C3 = 40, 128
    logits3 = jax.random.normal(k5, (N3, C3), dtype=jnp.bfloat16)
    targets3 = jax.random.randint(k6, (N3,), 0, C3, dtype=jnp.int32)
    loss3 = jax.block_until_ready(cross_entropy(logits3, targets3,
                                                reduction="none"))
    ref3 = _reference_ce(logits3, targets3, reduction="none")
    assert jnp.allclose(loss3, ref3, atol=2e-2, rtol=2e-2), (loss3, ref3)

    print("KERNEL_OK")
</pallas_src>

<mosaic_0001>
module attributes {stable_mosaic.version = 11 : i64} {
  func.func @_ce_rows_kernel(%arg0: i32, %arg1: memref<8x32xf32, #tpu.memory_space<vmem>>, %arg2: memref<8x1xi32, #tpu.memory_space<vmem>>, %arg3: memref<8x1xf32, #tpu.memory_space<vmem>>) attributes {dimension_semantics = [#tpu.dimension_semantics<parallel>], iteration_bounds = array<i64: 1>, scalar_prefetch = 0 : i64, scratch_operands = 0 : i64, tpu.core_type = #tpu.core_type<tc>, window_params = [{transform_indices = @transform_0, window_bounds = array<i64: 8, 32>}, {transform_indices = @transform_1, window_bounds = array<i64: 8, 1>}, {transform_indices = @transform_2, window_bounds = array<i64: 8, 1>}]} {
    %c0 = arith.constant 0 : index
    %c0_0 = arith.constant 0 : index
    %0 = vector.load %arg1[%c0, %c0_0] : memref<8x32xf32, #tpu.memory_space<vmem>>, vector<8x32xf32>
    %c0_1 = arith.constant 0 : index
    %c0_2 = arith.constant 0 : index
    %1 = vector.load %arg2[%c0_1, %c0_2] : memref<8x1xi32, #tpu.memory_space<vmem>>, vector<8x1xi32>
    %cst = arith.constant dense<0xFF800000> : vector<8xf32>
    %2 = vector.multi_reduction <maximumf>, %0, %cst [1] : vector<8x32xf32> to vector<8xf32>
    %3 = vector.shape_cast %2 : vector<8xf32> to vector<8x1xf32>
    %4 = vector.broadcast %3 : vector<8x1xf32> to vector<8x32xf32>
    %5 = arith.subf %0, %4 : vector<8x32xf32>
    %6 = math.exp %5 : vector<8x32xf32>
    %cst_3 = arith.constant dense<0.000000e+00> : vector<8xf32>
    %7 = vector.multi_reduction <add>, %6, %cst_3 [1] : vector<8x32xf32> to vector<8xf32>
    %8 = vector.shape_cast %7 : vector<8xf32> to vector<8x1xf32>
    %9 = tpu.iota {dimensions = array<i32: 1>} : vector<1x32xi32>
    %10 = vector.broadcast %9 : vector<1x32xi32> to vector<8x32xi32>
    %11 = vector.broadcast %1 : vector<8x1xi32> to vector<8x32xi32>
    %12 = arith.cmpi eq, %10, %11 : vector<8x32xi32>
    %cst_4 = arith.constant 0.000000e+00 : f32
    %13 = vector.broadcast %cst_4 : f32 to vector<8x32xf32>
    %14 = arith.select %12, %5, %13 : vector<8x32xi1>, vector<8x32xf32>
    %cst_5 = arith.constant dense<0.000000e+00> : vector<8xf32>
    %15 = vector.multi_reduction <add>, %14, %cst_5 [1] : vector<8x32xf32> to vector<8xf32>
    %16 = vector.shape_cast %15 : vector<8xf32> to vector<8x1xf32>
    %17 = math.log %8 : vector<8x1xf32>
    %18 = arith.subf %17, %16 : vector<8x1xf32>
    %c0_6 = arith.constant 0 : index
    %c0_7 = arith.constant 0 : index
    %19 = vector.load %arg3[%c0_6, %c0_7] : memref<8x1xf32, #tpu.memory_space<vmem>>, vector<8x1xf32>
    tpu.vector_store %arg3[%c0_6, %c0_7], %18 {strides = array<i32>} : memref<8x1xf32, #tpu.memory_space<vmem>>, vector<8x1xf32>,
    return
  }
  func.func @transform_0(%arg0: i32) -> (i32, i32) {
    %c0_i32 = arith.constant 0 : i32
    %c0_i32_0 = arith.constant 0 : i32
    return %arg0, %c0_i32 : i32, i32
  }
  func.func @transform_1(%arg0: i32) -> (i32, i32) {
    %c0_i32 = arith.constant 0 : i32
    %c0_i32_0 = arith.constant 0 : i32
    return %arg0, %c0_i32 : i32, i32
  }
  func.func @transform_2(%arg0: i32) -> (i32, i32) {
    %c0_i32 = arith.constant 0 : i32
    %c0_i32_0 = arith.constant 0 : i32
    return %arg0, %c0_i32 : i32, i32
  }
}

</mosaic_0001>

<bundles_post_ra>
// kernel: cross_entropy.1
= control target key start
LH: loop header
LB: loop body
LE: loop exit
PB: predicated region body
PF: predicated region fallthrough
CT: control target
= control target key end

     0   :  { %vm13_vm0 = vcmask 261120   ;;  %v48_v1 = vmov 0   ;;  %v23_v9 = vlaneseq  ;;  %vm36_vm2 = vcmask 7168   ;;  %s76_s0 = inlined_call_operand.vmem [shape: f32[8,32], index: 0, kind: input, shape index: {}]   ;;  %s77_s1 = inlined_call_operand.vmem [shape: s32[8,1], index: 1, kind: input, shape index: {}]   ;;  %s78_s2 = inlined_call_operand.vmem [shape: f32[8,1], index: 2, kind: output, shape index: {}]  }
   0x1   :  { %v11_v0 = vld [vmem:[%s76_s0] sm:$0xff]  ;;  %43 = vset.pattern.permute.xlu0 %v48_v1 }
   0x2   :  { %v14_v2 = vsel %vm13_vm0, %v11_v0, -inf  ;;  %v12_v3 = vld [vmem:[%s77_s1] sm:$0xff]  ;;  %v24_v10 = vand.u32 127, %v23_v9 }
   0x3   :  { %15 = vmax.xlane.f32.xlu0 %v14_v2 }
  0x17   :  { %26 = vperm.xlu0 %43, %v12_v3  }
  0x76   :  { %v16_v4 = vpop.xlane.xlu0 %15 }
  0x77   :  { %v17_v5 = vsub.f32 %v11_v0, %v16_v4 }
  0x79   :  { %v18_v6 = vmul.f32 1.442695, %v17_v5 }
  0x7b   :  { %44 = vpow2.f32 %v18_v6 }
  0x81   :  { %v45_v7 = vpop.eup %44 }
  0x82   :  { %v20_v8 = vsel %vm13_vm0, %v45_v7, 0.0 }
  0x83   :  { %21 = vadd.xlane.f32.xlu1 %v20_v8 }
  0x89   :  { %v27_v11 = vpop.permute.xlu0 %26 }
  0x8a   :  { %vm28_vm1 = vcmp.eq.s32.totalorder %v24_v10, %v27_v11 }
  0x8b   :  { %v29_v12 = vsel %vm28_vm1, %v17_v5, 0.0 }
  0x8c   :  { %v30_v13 = vsel %vm13_vm0, %v29_v12, 0.0 }
  0x8d   :  { %31 = vadd.xlane.f32.xlu1 %v30_v13 }
  0xf6   :  { %v22_v14 = vpop.xlane.xlu1 %21 }
  0xf7   :  { %46 = vlog2.f32 %v22_v14 }
  0xfd   :  { %v47_v15 = vpop.eup %46 }
  0xfe   :  { %v34_v16 = vmul.f32 0.6931472, %v47_v15 }
 0x100   :  { %v32_v17 = vpop.xlane.xlu1 %31 }
 0x101   :  { %v35_v18 = vsub.f32 %v34_v16, %v32_v17 }
 0x103   :  { %37 = vst.msk [vmem:[%s78_s2] sm:$0xff] %vm36_vm2, %v35_v18 }

</bundles_post_ra>
